<compile_context>
chip_gen: v7x
topology: tpu7x:2x2x1
jax: 0.10.0
libtpu: 0.0.40
codegen_flags: <defaults>
</compile_context>

<pallas_src>
import functools
import math

import jax
import jax.numpy as jnp
from jax.experimental import pallas as pl
from jax.experimental.pallas import tpu as pltpu


def _attention_kernel(x_ref, mask_ref, wqkv_ref, bqkv_ref, wo_ref, bo_ref, o_ref, attn_ref,
                      *, head_dim: int, heads_per_block: int, num_head_blocks: int):
    """One grid step = one batch element x one block of `heads_per_block` heads.

    Per-head attention outputs are written into their head-major lane slice of the resident
    (S, D) bf16 scratch `attn_ref`; the output projection runs once (full MXU depth K=D) at
    the last head block, with a single store of the output block.
    """
    hb = pl.program_id(1)
    hd = head_dim
    bw = heads_per_block * hd                       # lane width of one Q / K / V group

    x = x_ref[0]                                    # (S, D)  bf16 (cast once, wrapper-side)
    mask = mask_ref[0]                              # (1, S)  additive key mask, f32

    # Fused Q|K|V projection for the whole head block: one wide MXU matmul, full contraction
    # depth K=D, output width 3*bw, f32 accumulation.  Softmax scale folded into Wq/bq.
    qkv = jnp.dot(x, wqkv_ref[0], preferred_element_type=jnp.float32) + bqkv_ref[0]  # (S, 3*bw)

    for i in range(heads_per_block):
        # Lane slices at multiples of head_dim (lane-aligned / free when head_dim % 128 == 0).
        q = qkv[:, i * hd:(i + 1) * hd].astype(jnp.bfloat16)
        k = qkv[:, bw + i * hd:bw + (i + 1) * hd].astype(jnp.bfloat16)
        v = qkv[:, 2 * bw + i * hd:2 * bw + (i + 1) * hd].astype(jnp.bfloat16)

        # scores = q @ k.T without materializing a transpose (contract last dims of both).
        scores = jax.lax.dot_general(q, k, (((1,), (1,)), ((), ())),
                                     preferred_element_type=jnp.float32)    # (S, S) f32
        scores = scores + mask                                               # broadcast over queries

        # Numerically stable softmax; stats in f32, normalization deferred past P @ V so the
        # divide touches (S, hd) elements.  approx reciprocal -> EUP slot (inference path).
        m = jnp.max(scores, axis=-1, keepdims=True)
        p = jnp.exp(scores - m)
        l = jnp.sum(p, axis=-1, keepdims=True)
        attn = jnp.dot(p.astype(jnp.bfloat16), v, preferred_element_type=jnp.float32)  # (S, hd)
        attn = attn * pl.reciprocal(l, approx=True)

        # Write this head's result into its head-major lane slice of the resident scratch.
        if num_head_blocks == 1:
            attn_ref[:, i * hd:(i + 1) * hd] = attn.astype(jnp.bfloat16)     # static offsets
        else:
            col0 = pl.multiple_of(hb * bw + i * hd, hd)
            attn_ref[:, pl.ds(col0, hd)] = attn.astype(jnp.bfloat16)

    # Deferred output projection: exactly one (S, D) @ (D, D) matmul with full MXU depth and
    # a single store of the output block (no per-head read-modify-write of o_ref).
    @pl.when(hb == pl.num_programs(1) - 1)
    def _():
        out = jnp.dot(attn_ref[...], wo_ref[...], preferred_element_type=jnp.float32)  # (S, D)
        o_ref[0] = (out + bo_ref[...]).astype(o_ref.dtype)


def prepare_attention_params(params, *, num_heads: int, heads_per_block: int | None = None):
    """One-time parameter transform (hoisted out of the per-call forward path).

    PyTorch nn.Linear stores weights as (out_features, in_features); the kernel wants
    (in, out).  Heads are grouped into blocks of `heads_per_block` (default: all heads);
    for head block j we build
        wqkv[j] = [Wq_blk^T * scale | Wk_blk^T | Wv_blk^T]  -> (D, 3*Hb*hd)  bf16
        bqkv[j] = [bq_blk * scale   | bk_blk   | bv_blk  ]  -> (1, 3*Hb*hd)  f32
    and the output projection stays whole:
        wo = Wo^T  -> (D, D) bf16 (head-major rows, matching the attn scratch layout)
        bo         -> (1, D) f32
    The 1/sqrt(head_dim) softmax scale is folded into the Q projection.
    """
    D = params["wq"].shape[0]
    hd = D // num_heads
    if heads_per_block is None:
        heads_per_block = num_heads
    if num_heads % heads_per_block != 0:
        raise ValueError("num_heads must be divisible by heads_per_block")
    nhb = num_heads // heads_per_block
    bw = heads_per_block * hd
    scale = hd ** (-0.5)

    def blocked(w_t):  # (D, D) -> (nhb, D, Hb*hd): output columns of each head block
        return jnp.transpose(w_t.reshape(D, nhb, bw), (1, 0, 2))

    wq_b = blocked(params["wq"].T * scale)
    wk_b = blocked(params["wk"].T)
    wv_b = blocked(params["wv"].T)
    wqkv = jnp.concatenate([wq_b, wk_b, wv_b], axis=2)                  # (nhb, D, 3*bw)

    def blocked_bias(b):  # (D,) -> (nhb, 1, Hb*hd)
        return b.reshape(nhb, 1, bw)

    bqkv = jnp.concatenate([blocked_bias(params["bq"] * scale),
                            blocked_bias(params["bk"]),
                            blocked_bias(params["bv"])], axis=2)        # (nhb, 1, 3*bw)

    wo = params["wo"].T                                                 # (D, D)
    bo = params["bo"].reshape(1, D)

    return {
        "wqkv": wqkv.astype(jnp.bfloat16),
        "bqkv": bqkv.astype(jnp.float32),
        "wo": wo.astype(jnp.bfloat16),
        "bo": bo.astype(jnp.float32),
    }


def attention_forward(x, attention_mask, prep, *, num_heads: int):
    """x: [B, S, D] float32; attention_mask: None, or bool/float mask broadcastable over
    queries (e.g. [B, S]); prep: output of prepare_attention_params (built once at init)."""
    B, S, D = x.shape
    head_dim = D // num_heads
    num_head_blocks = prep["wqkv"].shape[0]
    heads_per_block = num_heads // num_head_blocks
    qkv_w = 3 * heads_per_block * head_dim

    # Additive mask [B, 1, S]: 0 = attend, finfo.min = masked (mirrors the module's
    # _prepare_attention_mask: bool True = attend; float > -10000 = attend).
    if attention_mask is None:
        add_mask = jnp.zeros((B, 1, S), dtype=jnp.float32)
    else:
        if attention_mask.dtype == jnp.bool_:
            bool_mask = attention_mask
        else:
            bool_mask = attention_mask > -10000.0
        bool_mask = bool_mask.reshape(B, 1, S)
        add_mask = jnp.where(bool_mask, 0.0, jnp.finfo(jnp.float32).min).astype(jnp.float32)

    # Cast once wrapper-side: halves x's HBM->VMEM bytes and removes the in-kernel cast that
    # would otherwise re-run every head-block step.
    x_bf16 = x.astype(jnp.bfloat16)

    kernel = functools.partial(_attention_kernel, head_dim=head_dim,
                               heads_per_block=heads_per_block,
                               num_head_blocks=num_head_blocks)

    return pl.pallas_call(
        kernel,
        out_shape=jax.ShapeDtypeStruct((B, S, D), x.dtype),
        grid_spec=pltpu.PrefetchScalarGridSpec(
            num_scalar_prefetch=0,
            grid=(B, num_head_blocks),     # head-block axis innermost (reduction into scratch)
            in_specs=[
                pl.BlockSpec((1, S, D), lambda b, h: (b, 0, 0)),      # x, resident across h
                pl.BlockSpec((1, 1, S), lambda b, h: (b, 0, 0)),      # additive mask, resident
                pl.BlockSpec((1, D, qkv_w), lambda b, h: (h, 0, 0)),  # fused Wq|Wk|Wv, block h
                pl.BlockSpec((1, 1, qkv_w), lambda b, h: (h, 0, 0)),  # fused bias, block h
                pl.BlockSpec((D, D), lambda b, h: (0, 0)),            # Wo^T, DMA'd once (const idx)
                pl.BlockSpec((1, D), lambda b, h: (0, 0)),            # bo, DMA'd once
            ],
            out_specs=pl.BlockSpec((1, S, D), lambda b, h: (b, 0, 0)),  # written only at last h
            scratch_shapes=[pltpu.VMEM((S, D), jnp.bfloat16)],          # head-major attn scratch
        ),
        compiler_params=pltpu.CompilerParams(
            dimension_semantics=("parallel", "arbitrary"),
            # 64 MiB: larger than the old 32 MiB cap (helps v5e/v6e tiles) while staying
            # within v7x's 64 MiB per-TC VMEM.  Re-sweep at production sizes per generation.
            vmem_limit_bytes=64 * 1024 * 1024,
        ),
    )(x_bf16, add_mask, prep["wqkv"], prep["bqkv"], prep["wo"], prep["bo"])


def _reference_forward(x, attention_mask, params, *, num_heads: int):
    """Pure-JAX f32 reference matching the PyTorch manual attention path (eval mode)."""
    B, S, D = x.shape
    hd = D // num_heads
    scale = hd ** (-0.5)

    def proj(t, w, b):
        return t @ w.T + b

    q = proj(x, params["wq"], params["bq"]).reshape(B, S, num_heads, hd).transpose(0, 2, 1, 3)
    k = proj(x, params["wk"], params["bk"]).reshape(B, S, num_heads, hd).transpose(0, 2, 1, 3)
    v = proj(x, params["wv"], params["bv"]).reshape(B, S, num_heads, hd).transpose(0, 2, 1, 3)

    scores = jnp.einsum("bhqd,bhkd->bhqk", q, k) * scale
    if attention_mask is not None:
        bool_mask = attention_mask.astype(jnp.bool_).reshape(B, 1, 1, S)
        scores = scores + jnp.where(bool_mask, 0.0, jnp.finfo(x.dtype).min).astype(x.dtype)
    probs = jax.nn.softmax(scores, axis=-1)
    attn = jnp.einsum("bhqk,bhkd->bhqd", probs, v)
    attn = attn.transpose(0, 2, 1, 3).reshape(B, S, D)
    return attn @ params["wo"].T + params["bo"]


if __name__ == "__main__":
    # config: hidden_size=32, num_attention_heads=4 -> head_dim=8
    B, S, D, NH = 2, 8, 32, 4

    key = jax.random.PRNGKey(0)
    keys = jax.random.split(key, 10)

    bound = 1.0 / math.sqrt(D)  # nn.Linear default init range
    params = {
        "wq": jax.random.uniform(keys[0], (D, D), jnp.float32, -bound, bound),
        "bq": jax.random.uniform(keys[1], (D,), jnp.float32, -bound, bound),
        "wk": jax.random.uniform(keys[2], (D, D), jnp.float32, -bound, bound),
        "bk": jax.random.uniform(keys[3], (D,), jnp.float32, -bound, bound),
        "wv": jax.random.uniform(keys[4], (D, D), jnp.float32, -bound, bound),
        "bv": jax.random.uniform(keys[5], (D,), jnp.float32, -bound, bound),
        "wo": jax.random.uniform(keys[6], (D, D), jnp.float32, -bound, bound),
        "bo": jax.random.uniform(keys[7], (D,), jnp.float32, -bound, bound),
    }

    x = jax.random.normal(keys[8], (B, S, D), jnp.float32)

    # boolean attention mask [B, S]: True = attend. Mask out last 2 key positions of batch 1.
    attention_mask = jnp.ones((B, S), dtype=jnp.bool_).at[1, -2:].set(False)

    prep = prepare_attention_params(params, num_heads=NH)   # one-time init-side transform

    out = attention_forward(x, attention_mask, prep, num_heads=NH)
    out = jax.block_until_ready(out)

    ref = _reference_forward(x, attention_mask, params, num_heads=NH)
    assert out.shape == (B, S, D)
    # bf16 MXU operands (f32 accumulation) + approx EUP reciprocal vs. a pure-f32 reference.
    assert jnp.allclose(out, ref, atol=2e-2, rtol=2e-2), "Pallas output mismatch vs reference"

    print("KERNEL_OK")
</pallas_src>

<mosaic_0001>
module attributes {stable_mosaic.version = 11 : i64} {
  func.func @_attention_kernel(%arg0: i32, %arg1: i32, %arg2: memref<1x8x32xbf16, #tpu.memory_space<vmem>>, %arg3: memref<1x1x8xf32, #tpu.memory_space<vmem>>, %arg4: memref<1x32x96xbf16, #tpu.memory_space<vmem>>, %arg5: memref<1x1x96xf32, #tpu.memory_space<vmem>>, %arg6: memref<32x32xbf16, #tpu.memory_space<vmem>>, %arg7: memref<1x32xf32, #tpu.memory_space<vmem>>, %arg8: memref<1x8x32xf32, #tpu.memory_space<vmem>>, %arg9: memref<8x32xbf16, #tpu.memory_space<vmem>>) attributes {dimension_semantics = [#tpu.dimension_semantics<parallel>, #tpu.dimension_semantics<arbitrary>], iteration_bounds = array<i64: 2, 1>, scalar_prefetch = 0 : i64, scratch_operands = 1 : i64, tpu.core_type = #tpu.core_type<tc>, window_params = [{transform_indices = @transform_0, window_bounds = array<i64: 1, 8, 32>}, {transform_indices = @transform_1, window_bounds = array<i64: 1, 1, 8>}, {transform_indices = @transform_2, window_bounds = array<i64: 1, 32, 96>}, {transform_indices = @transform_3, window_bounds = array<i64: 1, 1, 96>}, {pipeline_mode = #tpu.pipeline_mode<synchronous>, transform_indices = @transform_4, window_bounds = array<i64: 32, 32>}, {pipeline_mode = #tpu.pipeline_mode<synchronous>, transform_indices = @transform_5, window_bounds = array<i64: 1, 32>}, {transform_indices = @transform_6, window_bounds = array<i64: 1, 8, 32>}]} {
    %c0 = arith.constant 0 : index
    %c0_0 = arith.constant 0 : index
    %c0_1 = arith.constant 0 : index
    %0 = vector.load %arg2[%c0, %c0_0, %c0_1] : memref<1x8x32xbf16, #tpu.memory_space<vmem>>, vector<1x8x32xbf16>
    %1 = vector.shape_cast %0 : vector<1x8x32xbf16> to vector<8x32xbf16>
    %c0_2 = arith.constant 0 : index
    %c0_3 = arith.constant 0 : index
    %c0_4 = arith.constant 0 : index
    %2 = vector.load %arg3[%c0_2, %c0_3, %c0_4] : memref<1x1x8xf32, #tpu.memory_space<vmem>>, vector<1x1x8xf32>
    %3 = vector.shape_cast %2 : vector<1x1x8xf32> to vector<1x8xf32>
    %c0_5 = arith.constant 0 : index
    %c0_6 = arith.constant 0 : index
    %c0_7 = arith.constant 0 : index
    %4 = vector.load %arg4[%c0_5, %c0_6, %c0_7] : memref<1x32x96xbf16, #tpu.memory_space<vmem>>, vector<1x32x96xbf16>
    %5 = vector.shape_cast %4 : vector<1x32x96xbf16> to vector<32x96xbf16>
    %cst = arith.constant dense<0.000000e+00> : vector<8x96xf32>
    %6 = tpu.matmul %1, %5, %cst {dimension_numbers = #tpu.dot_dimension_numbers<[1], [0], [0], [1], [0, 0, 1, 1], [], []>} : vector<8x32xbf16>, vector<32x96xbf16>, vector<8x96xf32> -> vector<8x96xf32>
    %c0_8 = arith.constant 0 : index
    %c0_9 = arith.constant 0 : index
    %c0_10 = arith.constant 0 : index
    %7 = vector.load %arg5[%c0_8, %c0_9, %c0_10] : memref<1x1x96xf32, #tpu.memory_space<vmem>>, vector<1x1x96xf32>
    %8 = vector.shape_cast %7 : vector<1x1x96xf32> to vector<1x96xf32>
    %9 = vector.broadcast %8 : vector<1x96xf32> to vector<8x96xf32>
    %10 = arith.addf %6, %9 : vector<8x96xf32>
    %11 = vector.extract_strided_slice %10 {offsets = [0, 0], sizes = [8, 8], strides = [1, 1]} : vector<8x96xf32> to vector<8x8xf32>
    %12 = arith.truncf %11 : vector<8x8xf32> to vector<8x8xbf16>
    %13 = vector.extract_strided_slice %10 {offsets = [0, 32], sizes = [8, 8], strides = [1, 1]} : vector<8x96xf32> to vector<8x8xf32>
    %14 = arith.truncf %13 : vector<8x8xf32> to vector<8x8xbf16>
    %15 = vector.extract_strided_slice %10 {offsets = [0, 64], sizes = [8, 8], strides = [1, 1]} : vector<8x96xf32> to vector<8x8xf32>
    %16 = arith.truncf %15 : vector<8x8xf32> to vector<8x8xbf16>
    %cst_11 = arith.constant dense<0.000000e+00> : vector<8x8xf32>
    %17 = tpu.matmul %12, %14, %cst_11 {dimension_numbers = #tpu.dot_dimension_numbers<[1], [1], [0], [0], [0, 0, 1, 0], [], []>} : vector<8x8xbf16>, vector<8x8xbf16>, vector<8x8xf32> -> vector<8x8xf32>
    %18 = vector.broadcast %3 : vector<1x8xf32> to vector<8x8xf32>
    %19 = arith.addf %17, %18 : vector<8x8xf32>
    %cst_12 = arith.constant dense<0xFF800000> : vector<8xf32>
    %20 = vector.multi_reduction <maximumf>, %19, %cst_12 [1] : vector<8x8xf32> to vector<8xf32>
    %21 = vector.shape_cast %20 : vector<8xf32> to vector<8x1xf32>
    %22 = vector.broadcast %21 : vector<8x1xf32> to vector<8x8xf32>
    %23 = arith.subf %19, %22 : vector<8x8xf32>
    %24 = math.exp %23 : vector<8x8xf32>
    %cst_13 = arith.constant dense<0.000000e+00> : vector<8xf32>
    %25 = vector.multi_reduction <add>, %24, %cst_13 [1] : vector<8x8xf32> to vector<8xf32>
    %26 = vector.shape_cast %25 : vector<8xf32> to vector<8x1xf32>
    %27 = arith.truncf %24 : vector<8x8xf32> to vector<8x8xbf16>
    %cst_14 = arith.constant dense<0.000000e+00> : vector<8x8xf32>
    %28 = tpu.matmul %27, %16, %cst_14 {dimension_numbers = #tpu.dot_dimension_numbers<[1], [0], [0], [1], [0, 0, 1, 1], [], []>} : vector<8x8xbf16>, vector<8x8xbf16>, vector<8x8xf32> -> vector<8x8xf32>
    %29 = tpu.reciprocal %26 {approx = true} : vector<8x1xf32> -> vector<8x1xf32>
    %30 = vector.broadcast %29 : vector<8x1xf32> to vector<8x8xf32>
    %31 = arith.mulf %28, %30 : vector<8x8xf32>
    %32 = arith.truncf %31 : vector<8x8xf32> to vector<8x8xbf16>
    %c0_15 = arith.constant 0 : index
    %c0_16 = arith.constant 0 : index
    %33 = vector.load %arg9[%c0_15, %c0_16] : memref<8x32xbf16, #tpu.memory_space<vmem>>, vector<8x8xbf16>
    tpu.vector_store %arg9[%c0_15, %c0_16], %32 {strides = array<i32>} : memref<8x32xbf16, #tpu.memory_space<vmem>>, vector<8x8xbf16>,
    %34 = vector.extract_strided_slice %10 {offsets = [0, 8], sizes = [8, 8], strides = [1, 1]} : vector<8x96xf32> to vector<8x8xf32>
    %35 = arith.truncf %34 : vector<8x8xf32> to vector<8x8xbf16>
    %36 = vector.extract_strided_slice %10 {offsets = [0, 40], sizes = [8, 8], strides = [1, 1]} : vector<8x96xf32> to vector<8x8xf32>
    %37 = arith.truncf %36 : vector<8x8xf32> to vector<8x8xbf16>
    %38 = vector.extract_strided_slice %10 {offsets = [0, 72], sizes = [8, 8], strides = [1, 1]} : vector<8x96xf32> to vector<8x8xf32>
    %39 = arith.truncf %38 : vector<8x8xf32> to vector<8x8xbf16>
    %cst_17 = arith.constant dense<0.000000e+00> : vector<8x8xf32>
    %40 = tpu.matmul %35, %37, %cst_17 {dimension_numbers = #tpu.dot_dimension_numbers<[1], [1], [0], [0], [0, 0, 1, 0], [], []>} : vector<8x8xbf16>, vector<8x8xbf16>, vector<8x8xf32> -> vector<8x8xf32>
    %41 = vector.broadcast %3 : vector<1x8xf32> to vector<8x8xf32>
    %42 = arith.addf %40, %41 : vector<8x8xf32>
    %cst_18 = arith.constant dense<0xFF800000> : vector<8xf32>
    %43 = vector.multi_reduction <maximumf>, %42, %cst_18 [1] : vector<8x8xf32> to vector<8xf32>
    %44 = vector.shape_cast %43 : vector<8xf32> to vector<8x1xf32>
    %45 = vector.broadcast %44 : vector<8x1xf32> to vector<8x8xf32>
    %46 = arith.subf %42, %45 : vector<8x8xf32>
    %47 = math.exp %46 : vector<8x8xf32>
    %cst_19 = arith.constant dense<0.000000e+00> : vector<8xf32>
    %48 = vector.multi_reduction <add>, %47, %cst_19 [1] : vector<8x8xf32> to vector<8xf32>
    %49 = vector.shape_cast %48 : vector<8xf32> to vector<8x1xf32>
    %50 = arith.truncf %47 : vector<8x8xf32> to vector<8x8xbf16>
    %cst_20 = arith.constant dense<0.000000e+00> : vector<8x8xf32>
    %51 = tpu.matmul %50, %39, %cst_20 {dimension_numbers = #tpu.dot_dimension_numbers<[1], [0], [0], [1], [0, 0, 1, 1], [], []>} : vector<8x8xbf16>, vector<8x8xbf16>, vector<8x8xf32> -> vector<8x8xf32>
    %52 = tpu.reciprocal %49 {approx = true} : vector<8x1xf32> -> vector<8x1xf32>
    %53 = vector.broadcast %52 : vector<8x1xf32> to vector<8x8xf32>
    %54 = arith.mulf %51, %53 : vector<8x8xf32>
    %55 = arith.truncf %54 : vector<8x8xf32> to vector<8x8xbf16>
    %c0_21 = arith.constant 0 : index
    %c8 = arith.constant 8 : index
    %56 = vector.load %arg9[%c0_21, %c8] : memref<8x32xbf16, #tpu.memory_space<vmem>>, vector<8x8xbf16>
    tpu.vector_store %arg9[%c0_21, %c8], %55 {strides = array<i32>} : memref<8x32xbf16, #tpu.memory_space<vmem>>, vector<8x8xbf16>,
    %57 = vector.extract_strided_slice %10 {offsets = [0, 16], sizes = [8, 8], strides = [1, 1]} : vector<8x96xf32> to vector<8x8xf32>
    %58 = arith.truncf %57 : vector<8x8xf32> to vector<8x8xbf16>
    %59 = vector.extract_strided_slice %10 {offsets = [0, 48], sizes = [8, 8], strides = [1, 1]} : vector<8x96xf32> to vector<8x8xf32>
    %60 = arith.truncf %59 : vector<8x8xf32> to vector<8x8xbf16>
    %61 = vector.extract_strided_slice %10 {offsets = [0, 80], sizes = [8, 8], strides = [1, 1]} : vector<8x96xf32> to vector<8x8xf32>
    %62 = arith.truncf %61 : vector<8x8xf32> to vector<8x8xbf16>
    %cst_22 = arith.constant dense<0.000000e+00> : vector<8x8xf32>
    %63 = tpu.matmul %58, %60, %cst_22 {dimension_numbers = #tpu.dot_dimension_numbers<[1], [1], [0], [0], [0, 0, 1, 0], [], []>} : vector<8x8xbf16>, vector<8x8xbf16>, vector<8x8xf32> -> vector<8x8xf32>
    %64 = vector.broadcast %3 : vector<1x8xf32> to vector<8x8xf32>
    %65 = arith.addf %63, %64 : vector<8x8xf32>
    %cst_23 = arith.constant dense<0xFF800000> : vector<8xf32>
    %66 = vector.multi_reduction <maximumf>, %65, %cst_23 [1] : vector<8x8xf32> to vector<8xf32>
    %67 = vector.shape_cast %66 : vector<8xf32> to vector<8x1xf32>
    %68 = vector.broadcast %67 : vector<8x1xf32> to vector<8x8xf32>
    %69 = arith.subf %65, %68 : vector<8x8xf32>
    %70 = math.exp %69 : vector<8x8xf32>
    %cst_24 = arith.constant dense<0.000000e+00> : vector<8xf32>
    %71 = vector.multi_reduction <add>, %70, %cst_24 [1] : vector<8x8xf32> to vector<8xf32>
    %72 = vector.shape_cast %71 : vector<8xf32> to vector<8x1xf32>
    %73 = arith.truncf %70 : vector<8x8xf32> to vector<8x8xbf16>
    %cst_25 = arith.constant dense<0.000000e+00> : vector<8x8xf32>
    %74 = tpu.matmul %73, %62, %cst_25 {dimension_numbers = #tpu.dot_dimension_numbers<[1], [0], [0], [1], [0, 0, 1, 1], [], []>} : vector<8x8xbf16>, vector<8x8xbf16>, vector<8x8xf32> -> vector<8x8xf32>
    %75 = tpu.reciprocal %72 {approx = true} : vector<8x1xf32> -> vector<8x1xf32>
    %76 = vector.broadcast %75 : vector<8x1xf32> to vector<8x8xf32>
    %77 = arith.mulf %74, %76 : vector<8x8xf32>
    %78 = arith.truncf %77 : vector<8x8xf32> to vector<8x8xbf16>
    %c0_26 = arith.constant 0 : index
    %c16 = arith.constant 16 : index
    %79 = vector.load %arg9[%c0_26, %c16] : memref<8x32xbf16, #tpu.memory_space<vmem>>, vector<8x8xbf16>
    tpu.vector_store %arg9[%c0_26, %c16], %78 {strides = array<i32>} : memref<8x32xbf16, #tpu.memory_space<vmem>>, vector<8x8xbf16>,
    %80 = vector.extract_strided_slice %10 {offsets = [0, 24], sizes = [8, 8], strides = [1, 1]} : vector<8x96xf32> to vector<8x8xf32>
    %81 = arith.truncf %80 : vector<8x8xf32> to vector<8x8xbf16>
    %82 = vector.extract_strided_slice %10 {offsets = [0, 56], sizes = [8, 8], strides = [1, 1]} : vector<8x96xf32> to vector<8x8xf32>
    %83 = arith.truncf %82 : vector<8x8xf32> to vector<8x8xbf16>
    %84 = vector.extract_strided_slice %10 {offsets = [0, 88], sizes = [8, 8], strides = [1, 1]} : vector<8x96xf32> to vector<8x8xf32>
    %85 = arith.truncf %84 : vector<8x8xf32> to vector<8x8xbf16>
    %cst_27 = arith.constant dense<0.000000e+00> : vector<8x8xf32>
    %86 = tpu.matmul %81, %83, %cst_27 {dimension_numbers = #tpu.dot_dimension_numbers<[1], [1], [0], [0], [0, 0, 1, 0], [], []>} : vector<8x8xbf16>, vector<8x8xbf16>, vector<8x8xf32> -> vector<8x8xf32>
    %87 = vector.broadcast %3 : vector<1x8xf32> to vector<8x8xf32>
    %88 = arith.addf %86, %87 : vector<8x8xf32>
    %cst_28 = arith.constant dense<0xFF800000> : vector<8xf32>
    %89 = vector.multi_reduction <maximumf>, %88, %cst_28 [1] : vector<8x8xf32> to vector<8xf32>
    %90 = vector.shape_cast %89 : vector<8xf32> to vector<8x1xf32>
    %91 = vector.broadcast %90 : vector<8x1xf32> to vector<8x8xf32>
    %92 = arith.subf %88, %91 : vector<8x8xf32>
    %93 = math.exp %92 : vector<8x8xf32>
    %cst_29 = arith.constant dense<0.000000e+00> : vector<8xf32>
    %94 = vector.multi_reduction <add>, %93, %cst_29 [1] : vector<8x8xf32> to vector<8xf32>
    %95 = vector.shape_cast %94 : vector<8xf32> to vector<8x1xf32>
    %96 = arith.truncf %93 : vector<8x8xf32> to vector<8x8xbf16>
    %cst_30 = arith.constant dense<0.000000e+00> : vector<8x8xf32>
    %97 = tpu.matmul %96, %85, %cst_30 {dimension_numbers = #tpu.dot_dimension_numbers<[1], [0], [0], [1], [0, 0, 1, 1], [], []>} : vector<8x8xbf16>, vector<8x8xbf16>, vector<8x8xf32> -> vector<8x8xf32>
    %98 = tpu.reciprocal %95 {approx = true} : vector<8x1xf32> -> vector<8x1xf32>
    %99 = vector.broadcast %98 : vector<8x1xf32> to vector<8x8xf32>
    %100 = arith.mulf %97, %99 : vector<8x8xf32>
    %101 = arith.truncf %100 : vector<8x8xf32> to vector<8x8xbf16>
    %c0_31 = arith.constant 0 : index
    %c24 = arith.constant 24 : index
    %102 = vector.load %arg9[%c0_31, %c24] : memref<8x32xbf16, #tpu.memory_space<vmem>>, vector<8x8xbf16>
    tpu.vector_store %arg9[%c0_31, %c24], %101 {strides = array<i32>} : memref<8x32xbf16, #tpu.memory_space<vmem>>, vector<8x8xbf16>,
    %c0_i32 = arith.constant 0 : i32
    %103 = arith.cmpi eq, %arg1, %c0_i32 : i32
    %104 = arith.extui %103 : i1 to i32
    %c0_i32_32 = arith.constant 0 : i32
    %105 = arith.cmpi ne, %104, %c0_i32_32 : i32
    scf.if %105 {
      %c0_33 = arith.constant 0 : index
      %c0_34 = arith.constant 0 : index
      %106 = vector.load %arg9[%c0_33, %c0_34] : memref<8x32xbf16, #tpu.memory_space<vmem>>, vector<8x32xbf16>
      %c0_35 = arith.constant 0 : index
      %c0_36 = arith.constant 0 : index
      %107 = vector.load %arg6[%c0_35, %c0_36] : memref<32x32xbf16, #tpu.memory_space<vmem>>, vector<32x32xbf16>
      %cst_37 = arith.constant dense<0.000000e+00> : vector<8x32xf32>
      %108 = tpu.matmul %106, %107, %cst_37 {dimension_numbers = #tpu.dot_dimension_numbers<[1], [0], [0], [1], [0, 0, 1, 1], [], []>} : vector<8x32xbf16>, vector<32x32xbf16>, vector<8x32xf32> -> vector<8x32xf32>
      %c0_38 = arith.constant 0 : index
      %c0_39 = arith.constant 0 : index
      %109 = vector.load %arg7[%c0_38, %c0_39] : memref<1x32xf32, #tpu.memory_space<vmem>>, vector<1x32xf32>
      %110 = vector.broadcast %109 : vector<1x32xf32> to vector<8x32xf32>
      %111 = arith.addf %108, %110 : vector<8x32xf32>
      %c0_40 = arith.constant 0 : index
      %c0_41 = arith.constant 0 : index
      %c0_42 = arith.constant 0 : index
      %112 = vector.load %arg8[%c0_40, %c0_41, %c0_42] : memref<1x8x32xf32, #tpu.memory_space<vmem>>, vector<1x8x32xf32>
      %113 = vector.shape_cast %112 : vector<1x8x32xf32> to vector<8x32xf32>
      %114 = vector.shape_cast %111 : vector<8x32xf32> to vector<1x8x32xf32>
      tpu.vector_store %arg8[%c0_40, %c0_41, %c0_42], %114 {strides = array<i32>} : memref<1x8x32xf32, #tpu.memory_space<vmem>>, vector<1x8x32xf32>,
    } else {
    }
    return
  }
  func.func @transform_0(%arg0: i32, %arg1: i32) -> (i32, i32, i32) {
    %c0_i32 = arith.constant 0 : i32
    %c0_i32_0 = arith.constant 0 : i32
    %c0_i32_1 = arith.constant 0 : i32
    return %arg0, %c0_i32, %c0_i32_0 : i32, i32, i32
  }
  func.func @transform_1(%arg0: i32, %arg1: i32) -> (i32, i32, i32) {
    %c0_i32 = arith.constant 0 : i32
    %c0_i32_0 = arith.constant 0 : i32
    %c0_i32_1 = arith.constant 0 : i32
    return %arg0, %c0_i32, %c0_i32_0 : i32, i32, i32
  }
  func.func @transform_2(%arg0: i32, %arg1: i32) -> (i32, i32, i32) {
    %c0_i32 = arith.constant 0 : i32
    %c0_i32_0 = arith.constant 0 : i32
    %c0_i32_1 = arith.constant 0 : i32
    return %arg1, %c0_i32, %c0_i32_0 : i32, i32, i32
  }
  func.func @transform_3(%arg0: i32, %arg1: i32) -> (i32, i32, i32) {
    %c0_i32 = arith.constant 0 : i32
    %c0_i32_0 = arith.constant 0 : i32
    %c0_i32_1 = arith.constant 0 : i32
    return %arg1, %c0_i32, %c0_i32_0 : i32, i32, i32
  }
  func.func @transform_4(%arg0: i32, %arg1: i32) -> (i32, i32) {
    %c0_i32 = arith.constant 0 : i32
    %c0_i32_0 = arith.constant 0 : i32
    %c0_i32_1 = arith.constant 0 : i32
    return %c0_i32, %c0_i32_0 : i32, i32
  }
  func.func @transform_5(%arg0: i32, %arg1: i32) -> (i32, i32) {
    %c0_i32 = arith.constant 0 : i32
    %c0_i32_0 = arith.constant 0 : i32
    %c0_i32_1 = arith.constant 0 : i32
    return %c0_i32, %c0_i32_0 : i32, i32
  }
  func.func @transform_6(%arg0: i32, %arg1: i32) -> (i32, i32, i32) {
    %c0_i32 = arith.constant 0 : i32
    %c0_i32_0 = arith.constant 0 : i32
    %c0_i32_1 = arith.constant 0 : i32
    return %arg0, %c0_i32, %c0_i32_0 : i32, i32, i32
  }
}

</mosaic_0001>

<bundles_post_ra>
// kernel: tpu_custom_call.1
= control target key start
LH: loop header
LB: loop body
LE: loop exit
PB: predicated region body
PF: predicated region fallthrough
CT: control target
= control target key end

     0   :  { %s2182_s0 = inlined_call_operand.hbm [shape: bf16[2,8,32], index: 0, kind: input, shape index: {}]   ;;  %s2183_s1 = inlined_call_operand.hbm [shape: f32[2,1,8], index: 1, kind: input, shape index: {}]   ;;  %s2184_s2 = inlined_call_operand.hbm [shape: bf16[1,32,96], index: 2, kind: input, shape index: {}]   ;;  %s2185_s3 = inlined_call_operand.hbm [shape: f32[1,1,96], index: 3, kind: input, shape index: {}]   ;;  %s2186_s4 = inlined_call_operand.hbm [shape: bf16[32,32], index: 4, kind: input, shape index: {}]   ;;  %s2187_s5 = inlined_call_operand.hbm [shape: f32[1,32], index: 5, kind: input, shape index: {}]   ;;  %s2188_s6 = inlined_call_operand.hbm [shape: f32[2,8,32], index: 6, kind: output, shape index: {}]  }
   0x1   :  { %2193 = sst [smem:[#allocation21_spill]] %s2182_s0 }
   0x2   :  { %2194 = sst [smem:[#allocation22_spill]] %s2184_s2 }
   0x3   :  { %2195 = sst [smem:[#allocation23_spill]] %s2185_s3 }
   0x4   :  { %11 = vsyncpa [#allocation4], 0 }
   0x5   :  { %13 = vsyncpa [#allocation4 + $0x1], 0 }
   0x6   :  { %14 = vsyncpa [#allocation7], 0 }
   0x7   :  { %16 = vsyncpa [#allocation7 + $0x1], 0 }
   0x8   :  { %17 = vsyncpa [#allocation10], 0 }
   0x9   :  { %18 = vsyncpa [#allocation13], 0 }
   0xa   :  { %19 = vsyncpa [#allocation5], 0 }
   0xb   :  { %21 = vsyncpa [#allocation5 + $0x1], 0  ;;  %s1765_s21 = smov 0   ;;  %s1767_s22 = smov 0  }
   0xc   :  { %s1769_s23 = smov 0   ;;  %s1771_s24 = smov 0  }
   0xd   :  { %s1773_s25 = smov 0   ;;  %s1775_s26 = smov 0  }
   0xe LB: > { %s1796_s27 = sadd.s32 4294967295, %s1703_s26   ;;  %p1158_p0 = scmp.ge.s32.totalorder %s1703_s26, 1  ;;  %s1703_s26 = sphi %s1775_s26, %s27_s26   ;;  %s1699_s25 = sphi %s1773_s25, %s2224_s25   ;;  %s1695_s24 = sphi %s1771_s24, %s2223_s24   ;;  %s1691_s23 = sphi %s1769_s23, %s2222_s23   ;;  %s1687_s22 = sphi %s1767_s22, %s2221_s22   ;;  %s1683_s21 = sphi %s1765_s21, %s2220_s21  }
   0xf   : > { %p2189_p1 = scmp.eq.s32.totalorder %s1796_s27, 0  ;;  %p216_p2 = scmp.lt.s32.totalorder %s1703_s26, 3 }
  0x10   : > { %s1705_s29 = smov [#allocation8]   ;;  %s1706_s8 = smov [#allocation9]  }
  0x11   : > { %p1801_p3 = pnand %p1158_p0, %p216_p2  ;;  %s231_s30 = sshll.u32 %s1705_s29, 4  ;;  %s1805_s30 = int_to_ptr.vmem [resolvable:$true] %s231_s30 }
  0x12   : > { %s247_s9 = sshll.u32 %s1706_s8, 4  ;;  %s1707_s10 = smov [#allocation11]   ;;  %s1816_s9 = int_to_ptr.vmem [resolvable:$true] %s247_s9 }
  0x13   : > { %s2196_s28 = scalar_select %p1801_p3, 1, 0 }
  0x14   : > { %p1309_p4 = pneg %p1801_p3  ;;  %s1818_s11 = sshll.u32 %s1707_s10, 4  ;;  %s258_s11 = int_to_ptr.vmem [resolvable:$true] %s1818_s11 }
  0x15   : > { %s2198_s2 = sld [smem:[#allocation22_spill]] }
  0x16   : > { %p1812_p6 = pnand %p1309_p4, %p2189_p1 }
  0x18   : > { %p1828_p8 = pneg %p1812_p6 }
  0x1b   : > { %s1433_s14 = scalar_lea.hbm %s2198_s2, 256 }
  0x1c   : > { %p1434_p7 = scmp.ne.s32.totalorder %s2198_s2, %s1433_s14  ;;  %p1440_p11 = scmp.lt.u32.totalorder %s1433_s14, %s2198_s2 }
  0x1e   : > { %p1436_p9 = pnand %p1828_p8, %p1434_p7 }
  0x20   : > { %p1437_p10 = pneg %p1436_p9 }
  0x22   : > { %p1442_p12 = pnand %p1440_p11, %p1437_p10 }
  0x24   : > { %1445 = shalt.err (!%p1442_p12)
}
  0x25   : > { %s1446_s20 = scalar_lea.vmem %s1805_s30, 256  ;;  %p1454_p4 = scmp.lt.s32.totalorder %s1805_s30, %s1805_s30 }
  0x26   : > { %p1447_p13 = scmp.ne.s32.totalorder %s1805_s30, %s1446_s20  ;;  %p1455_p5 = scmp.lt.s32.totalorder %s1446_s20, %s1446_s20 }
  0x28   : > { %p1449_p0 = pnand %p1447_p13, %p1828_p8  ;;  %p1456_p7 = por %p1455_p5, %p1454_p4 }
  0x2a   : > { %p1450_p2 = pneg %p1449_p0 }
  0x2c   : > { %p1457_p9 = pnand %p1456_p7, %p1450_p2 }
  0x2e   : > { %1460 = shalt.err (!%p1457_p9)
}
  0x2f   : > { %s1708_s29 = smov 64   ;;  %s1709_s8 = smov 4  }
  0x30   : > { %1312 = dma.hbm_to_vmem [thread:$0]  (!%p1812_p6), %s2198_s2, 256, %s1805_s30, [#allocation7], %s1708_s29, %s1708_s29, %s1709_s8  }
  0x31   : > { %s2200_s3 = sld [smem:[#allocation23_spill]] }
  0x37   : > { %s1461_s15 = scalar_lea.hbm %s2200_s3, 16 }
  0x38   : > { %p1462_p5 = scmp.ne.s32.totalorder %s2200_s3, %s1461_s15  ;;  %p1468_p12 = scmp.lt.u32.totalorder %s1461_s15, %s2200_s3 }
  0x3a   : > { %p1464_p10 = pnand %p1462_p5, %p1828_p8 }
  0x3c   : > { %p1465_p11 = pneg %p1464_p10 }
  0x3e   : > { %p1470_p13 = pnand %p1468_p12, %p1465_p11 }
  0x40   : > { %1473 = shalt.err (!%p1470_p13)
}
  0x41   : > { %s1474_s30 = scalar_lea.vmem %s1816_s9, 16  ;;  %s1481_s10 = scalar_lea.vmem %s1816_s9, 32 }
  0x42   : > { %p1475_p0 = scmp.ne.s32.totalorder %s1816_s9, %s1474_s30  ;;  %p1482_p7 = scmp.lt.s32.totalorder %s1816_s9, %s1816_s9 }
  0x43   : > { %p1483_p9 = scmp.lt.s32.totalorder %s1481_s10, %s1474_s30 }
  0x44   : > { %p1477_p2 = pnand %p1475_p0, %p1828_p8 }
  0x45   : > { %p1484_p5 = por %p1483_p9, %p1482_p7 }
  0x46   : > { %p1478_p4 = pneg %p1477_p2 }
  0x48   : > { %p1485_p10 = pnand %p1484_p5, %p1478_p4 }
  0x4a   : > { %1488 = shalt.err (!%p1485_p10)
}
  0x4b   : > { %1315 = dma.hbm_to_vmem [thread:$0]  (!%p1812_p6), %s2200_s3, 16, %s1816_s9, [#allocation10]  }
  0x4c   : > { %s1489_s16 = scalar_lea.hbm %s2186_s4, 256 }
  0x4d   : > { %p1490_p11 = scmp.ne.s32.totalorder %s2186_s4, %s1489_s16  ;;  %p1496_p0 = scmp.lt.u32.totalorder %s1489_s16, %s2186_s4 }
  0x4f   : > { %p1492_p12 = pnand %p1490_p11, %p1828_p8 }
  0x51   : > { %p1493_p13 = pneg %p1492_p12 }
  0x53   : > { %p1498_p2 = pnand %p1496_p0, %p1493_p13 }
  0x55   : > { %1501 = shalt.err (!%p1498_p2)
}
  0x56   : > { %s1502_s10 = scalar_lea.vmem %s258_s11, 256  ;;  %p1510_p5 = scmp.lt.s32.totalorder %s258_s11, %s258_s11 }
  0x57   : > { %p1503_p4 = scmp.ne.s32.totalorder %s258_s11, %s1502_s10  ;;  %p1511_p10 = scmp.lt.s32.totalorder %s1502_s10, %s1502_s10 }
  0x59   : > { %p1505_p7 = pnand %p1503_p4, %p1828_p8  ;;  %p1512_p1 = por %p1511_p10, %p1510_p5 }
  0x5b   : > { %p1506_p9 = pneg %p1505_p7 }
  0x5d   : > { %p1513_p3 = pnand %p1512_p1, %p1506_p9 }
  0x5f   : > { %1516 = shalt.err (!%p1513_p3)
}
  0x60   : > { %1318 = dma.hbm_to_vmem [thread:$0]  (!%p1812_p6), %s2186_s4, 256, %s258_s11, [#allocation10], %s1708_s29, %s1708_s29, %s1709_s8  }
  0x61   : > { %s1710_s13 = smov [#allocation12]   ;;  %s1517_s18 = scalar_lea.hbm %s2187_s5, 16 }
  0x62   : > { %s271_s14 = sshll.u32 %s1710_s13, 4  ;;  %p1518_p1 = scmp.ne.s32.totalorder %s2187_s5, %s1517_s18  ;;  %s272_s14 = int_to_ptr.vmem [resolvable:$true] %s271_s14 }
  0x63   : > { %p1524_p12 = scmp.lt.u32.totalorder %s1517_s18, %s2187_s5 }
  0x64   : > { %p1520_p3 = pnand %p1518_p1, %p1828_p8 }
  0x66   : > { %p1521_p11 = pneg %p1520_p3 }
  0x68   : > { %p1526_p13 = pnand %p1524_p12, %p1521_p11 }
  0x6a   : > { %1529 = shalt.err (!%p1526_p13)
}
  0x6b   : > { %s1530_s11 = scalar_lea.vmem %s272_s14, 16  ;;  %s1537_s29 = scalar_lea.vmem %s272_s14, 32 }
  0x6c   : > { %p1531_p0 = scmp.ne.s32.totalorder %s272_s14, %s1530_s11  ;;  %p1538_p7 = scmp.lt.s32.totalorder %s272_s14, %s272_s14 }
  0x6d   : > { %p1539_p9 = scmp.lt.s32.totalorder %s1537_s29, %s1530_s11 }
  0x6e   : > { %p1533_p2 = pnand %p1531_p0, %p1828_p8 }
  0x6f   : > { %p1540_p5 = por %p1539_p9, %p1538_p7 }
  0x70   : > { %p1534_p4 = pneg %p1533_p2 }
  0x72   : > { %p1541_p10 = pnand %p1540_p5, %p1534_p4 }
  0x74   : > { %1544 = shalt.err (!%p1541_p10)
}
  0x75   : > { %1321 = dma.hbm_to_vmem [thread:$0]  (!%p1812_p6), %s2187_s5, 16, %s272_s14, [#allocation13]  }
  0x76   : > { %s1157_s17 = sadd.s32 4294967294, %s1703_s26   ;;  %s39_s12 = sadd.s32 1, %s1699_s25 }
  0x77   : > { %p41_p8 = scmp.ge.s32.totalorder %s39_s12, 2  ;;  %s46_s7 = sadd.s32 1, %s1691_s23 }
  0x78   : > { %p53_p1 = scmp.ne.s32.totalorder %s1691_s23, %s1687_s22  ;;  %p54_p3 = scmp.eq.s32.totalorder %s1703_s26, 0 }
  0x79   : > { %s2226_s12 = smov (%p41_p8, %s39_s12), 0  ;;  %p59_p12 = scmp.ne.s32.totalorder %s1687_s22, %s1683_s21 }
  0x7a   : > { %p1924_p11 = por %p54_p3, %p53_p1  ;;  %s43_s14 = ssub.s32 %s1699_s25, %s2226_s12 }
  0x7b   : > { %p203_p6 = scmp.eq.s32.totalorder %s1796_s27, 1  ;;  %p44_p13 = scmp.eq.s32.totalorder %s43_s14, 0 }
  0x7c   : > { %p2202_p0 = scmp.eq.s32.totalorder %s1796_s27, 0  ;;  %p209_p7 = scmp.eq.s32.totalorder %s1157_s17, 1 }
  0x7d   : > { %p1939_p4 = por %p203_p6, %p53_p1  ;;  %p1337_p5 = scmp.lt.s32.totalorder %s1703_s26, 2 }
  0x7e   : > { %p1935_p2 = por %p2202_p0, %p59_p12  ;;  %p1946_p9 = por %p209_p7, %p59_p12 }
  0x7f   : > { %s2204_s16 = scalar_select %p1939_p4, 1, 0 }
  0x80   : > { %s2203_s15 = scalar_select %p1935_p2, 1, 0 }
  0x81   : > { %s1944_s18 = scalar_select %p44_p13, %s1691_s23, %s46_s7  }
  0x82   : > { %s2205_s19 = scalar_select %p1946_p9, 1, 0 }
  0x83   : > { %s1952_s20 = sand.u32 1, %s1691_s23   ;;  %s1165_s30 = sshll.u32 %s1699_s25, 6 }
  0x84   : > { %s1164_s10 = sshll.u32 %s1952_s20, 2  ;;  %s2206_s0 = sld [smem:[#allocation21_spill]] }
  0x85   : > { %s286_s9 = scalar_lea.vmem [#allocation3], %s1164_s10  ;;  %p1963_p10 = pnand %p1337_p5, %p1924_p11 }
  0x86   : > { %s293_s17 = sshll.u32 %s286_s9, 4  ;;  %s283_s2 = scalar_lea.sflag [#allocation4], %s1952_s20  ;;  %s1967_s17 = int_to_ptr.vmem [resolvable:$true] %s293_s17 }
  0x87   : > { %p1547_p1 = pneg %p1963_p10 }
  0x8a   : > { %s1959_s8 = scalar_lea.hbm %s2206_s0, %s1165_s30  ;;  %s1550_s10 = scalar_lea.hbm %s2206_s0, 128 }
  0x8b   : > { %s1545_s11 = scalar_lea.hbm %s1959_s8, 64  ;;  %p1551_p11 = scmp.lt.u32.totalorder %s1959_s8, %s2206_s0 }
  0x8c   : > { %p1546_p8 = scmp.ne.s32.totalorder %s1959_s8, %s1545_s11  ;;  %p1552_p6 = scmp.lt.u32.totalorder %s1550_s10, %s1545_s11 }
  0x8d   : > { %p1554_p0 = scmp.lt.u32.totalorder %s1545_s11, %s1959_s8 }
  0x8e   : > { %p1548_p3 = pnand %p1547_p1, %p1546_p8  ;;  %p1553_p13 = por %p1552_p6, %p1551_p11 }
  0x90   : > { %p1549_p12 = pneg %p1548_p3  ;;  %p1555_p7 = por %p1554_p0, %p1553_p13 }
  0x92   : > { %p1556_p5 = pnand %p1555_p7, %p1549_p12 }
  0x94   : > { %1559 = shalt.err (!%p1556_p5)
}
  0x95   : > { %s1560_s14 = scalar_lea.vmem %s1967_s17, 64  ;;  %s1711_s30 = smov [#allocation3]  }
  0x96   : > { %p1561_p8 = scmp.ne.s32.totalorder %s1967_s17, %s1560_s14  ;;  %s1565_s13 = sshll.u32 %s1711_s30, 4  ;;  %s1566_s13 = int_to_ptr.vmem [resolvable:$false] %s1565_s13 }
  0x97   : > { %s1567_s29 = scalar_lea.vmem %s1566_s13, 128  ;;  %p1568_p4 = scmp.lt.s32.totalorder %s1967_s17, %s1566_s13 }
  0x98   : > { %p1563_p3 = pnand %p1561_p8, %p1547_p1  ;;  %p1569_p11 = scmp.lt.s32.totalorder %s1567_s29, %s1560_s14 }
  0x9a   : > { %p1564_p9 = pneg %p1563_p3  ;;  %p1570_p6 = por %p1569_p11, %p1568_p4 }
  0x9c   : > { %p1571_p13 = pnand %p1570_p6, %p1564_p9 }
  0x9e   : > { %1574 = shalt.err (!%p1571_p13)
}
  0x9f   : > { %1325 = dma.hbm_to_vmem [thread:$0]  (!%p1963_p10), %s1959_s8, 64, %s1967_s17, %s283_s2  }
  0xa0   : > { %s1166_s11 = sshll.u32 %s1699_s25, 4  ;;  %s303_s14 = scalar_lea.vmem [#allocation6], %s1952_s20 }
  0xa1   : > { %s2000_s30 = scalar_lea.hbm %s2183_s1, %s1166_s11  ;;  %s310_s13 = sshll.u32 %s303_s14, 4  ;;  %s311_s13 = int_to_ptr.vmem [resolvable:$true] %s310_s13 }
  0xa2   : > { %s2208_s29 = sand.u32 1, %s1703_s26   ;;  %s1575_s3 = scalar_lea.hbm %s2000_s30, 16 }
  0xa3   : > { %s301_s0 = scalar_lea.sflag [#allocation7], %s2208_s29  ;;  %p1576_p4 = scmp.ne.s32.totalorder %s2000_s30, %s1575_s3 }
  0xa4   : > { %s1580_s17 = scalar_lea.hbm %s2183_s1, 32  ;;  %p1581_p0 = scmp.lt.u32.totalorder %s2000_s30, %s2183_s1 }
  0xa5   : > { %p1578_p9 = pnand %p1576_p4, %p1547_p1  ;;  %p1582_p7 = scmp.lt.u32.totalorder %s1580_s17, %s1575_s3 }
  0xa6   : > { %p1584_p8 = scmp.lt.u32.totalorder %s1575_s3, %s2000_s30 }
  0xa7   : > { %p1579_p12 = pneg %p1578_p9  ;;  %p1583_p5 = por %p1582_p7, %p1581_p0 }
  0xa9   : > { %p1585_p3 = por %p1584_p8, %p1583_p5 }
  0xab   : > { %p1586_p11 = pnand %p1585_p3, %p1579_p12 }
  0xad   : > { %1589 = shalt.err (!%p1586_p11)
}
  0xae   : > { %s1590_s20 = scalar_lea.vmem %s311_s13, 16  ;;  %s1712_s9 = smov [#allocation6]  }
  0xaf   : > { %p1591_p6 = scmp.ne.s32.totalorder %s311_s13, %s1590_s20  ;;  %s1595_s14 = sshll.u32 %s1712_s9, 4  ;;  %s1596_s14 = int_to_ptr.vmem [resolvable:$false] %s1595_s14 }
  0xb0   : > { %s1597_s29 = scalar_lea.vmem %s1596_s14, 32  ;;  %p1598_p9 = scmp.lt.s32.totalorder %s311_s13, %s1596_s14 }
  0xb1   : > { %p1593_p13 = pnand %p1591_p6, %p1547_p1  ;;  %p1599_p2 = scmp.lt.s32.totalorder %s1597_s29, %s1590_s20 }
  0xb3   : > { %p1594_p4 = pneg %p1593_p13  ;;  %p1600_p0 = por %p1599_p2, %p1598_p9 }
  0xb5   : > { %p1601_p7 = pnand %p1600_p0, %p1594_p4 }
  0xb7   : > { %1604 = shalt.err (!%p1601_p7)
}
  0xb8   : > { %1328 = dma.hbm_to_vmem [thread:$0]  (!%p1963_p10), %s2000_s30, 16, %s311_s13, %s301_s0  }
  0xb9   : > { %p2209_p12 = scmp.ne.s32.totalorder %s2196_s28, 0 }
  0xba   : > { %s2027_s3 = sand.u32 (!%p2209_p12), 1, %s1687_s22   ;;  %p2210_p1 = scmp.ne.s32.totalorder (!%p2209_p12), %s2203_s15, 0 }
  0xbb   : > { %319 = sbr.rel (%p2209_p12) target bundleno = 1550 (0x60e), region = 44  ;;  %s1168_s2 = sshll.u32 (!%p2209_p12), %s2027_s3, 2 }
  0xbc   : > { %s322_s8 = scalar_lea.sflag (!%p2209_p12), [#allocation4], %s2027_s3  ;;  %s325_s17 = scalar_lea.vmem (!%p2209_p12), [#allocation3], %s1168_s2 }
  0xc2   : > { %1658 = dma.done.wait (%p2210_p1), %s322_s8, 64  }
  0xc3   : > { %1660 = vsyncadd (%p2210_p1), %s322_s8, 4294967232  ;;  %s330_s0 = sand.u32 1, %s1796_s27   ;;  %s333_s7 = scalar_lea.vmem [#allocation6], %s2027_s3 }
  0xc4   : > { %s331_s28 = scalar_lea.sflag [#allocation7], %s330_s0 }
  0xc5   : > { %1662 = dma.done.wait (%p2210_p1), %s331_s28, 16  }
  0xc6   : > { %1664 = vsyncadd (%p2210_p1), %s331_s28, 4294967280  ;;  %p2211_p2 = scmp.eq.s32.totalorder %s1796_s27, 0 }
  0xc8   : > { %1666 = dma.done.wait (%p2211_p2), [#allocation7], 256   ;;  %p2212_p10 = pmov %p2211_p2 }
  0xc9   : > { %p2213_p5 = pmov %p2211_p2 }
  0xca   : > { %1668 = vsyncadd (%p2212_p10), [#allocation7], 4294967040 }
  0xcb   : > { %1670 = dma.done.wait (%p2213_p5), [#allocation10], 272   ;;  %p2214_p8 = pmov %p2211_p2 }
  0xcc   : > { %p2215_p3 = pmov %p2211_p2 }
  0xcd   : > { %1672 = vsyncadd (%p2214_p8), [#allocation10], 4294967024 }
  0xce   : > { %1674 = dma.done.wait (%p2215_p3), [#allocation13], 16   ;;  %p2216_p11 = pmov %p2211_p2 }
  0xcf   : > { %v1713_v0 = vmov 0.0   ;;  %vm1714_vm0 = vmmov 0   ;;  %v1413_v1 = vld [vmem:[#allocation8] sm:$0xff]   ;;  %v1414_v2 = vld [vmem:[#allocation8 + $0x8] sm:$0xff]   ;;  %v383_v3 = vld [vmem:[%s325_s17] sm:$0xf] }
  0xd0   : > { %1676 = vsyncadd (%p2216_p11), [#allocation13], 4294967280  ;;  %1223 = vmatprep.subr.bf16.mxu0 %v1713_v0  ;;  %1227 = vmatprep.mubr.msk.bf16.mxu0 %vm1714_vm0, %v1713_v0  ;;  %vm408_vm1 = vcmask 261120   ;;  %v1174_v4 = vld [vmem:[#allocation9] ss:$0 sm:$0xff]  ;;  %s1715_s27 = smov 120  }
  0xd1   : > { %1231 = vmatprep.subr.bf16.mxu1 %v1713_v0  ;;  %1233 = vmatprep.mubr.msk.bf16.mxu1 %vm1714_vm0, %v1713_v0  ;;  %s1716_s15 = smov 96   ;;  %s1717_s30 = smov 80   ;;  %vm462_vm2 = vcmask 64512   ;;  %v1178_v22 = vld [vmem:[%s333_s7] ss:$0 sm:$0xff]  ;;  %vm524_vm3 = vcmask 1043456  }
  0xd2   : > { %1224 = vmatpush3.bf16.msra.mxu0 %v1413_v1  ;;  %s1718_s13 = smov 88   ;;  %s1719_s11 = smov 72   ;;  %vm571_vm4 = vcmask 60416   ;;  %vm690_vm5 = vcmask 126016   ;;  %vm809_vm6 = vcmask 191616   ;;  %vm928_vm7 = vcmask 257216  }
  0xd3   : > { %1225 = vmatprep.subr.bf16.mxu0 %v1713_v0  ;;  %s1720_s10 = smov 112   ;;  %s1721_s20 = smov 104  }
  0xd4   : > { %s1722_s9 = smov 56   ;;  %s1723_s14 = smov 64  }
  0xd5   : > { %s1724_s29 = smov 40   ;;  %s1725_s2 = smov 48  }
  0xd6   : > { %1226 = vmatpush3.bf16.msra.mxu0 %v1414_v2  ;;  %s1726_s8 = smov 8   ;;  %s1727_s17 = smov 16  }
  0xd7   : > { %1237 = vmatprep.subr.bf16.mxu0 %v1713_v0  ;;  %s1728_s0 = smov 24   ;;  %s1173_s28 = sshll.u32 %s2027_s3, 3 }
  0xd8   : > { %s1195_s7 = sshll.u32 %s1695_s24, 7  ;;  %s1003_s24 = scalar_lea.sflag [#allocation5], %s2027_s3 }
  0xd9   : > { %1228 = vmatmul.mubr.msk.bf16.vlgmr.msra.gmra.mrb[0].mxu0 %vm408_vm1, %v383_v3  ;;  %p2217_p13 = scmp.ne.s32.totalorder %s2204_s16, 0 }
  0xda   : > { %1239 = vmatprep.mubr.msk.bf16.mxu0 %vm1714_vm0, %v1713_v0 }
 0x1ac   : > { %v446_v5 = vpop.f32.mrb[0].mxu0 }
 0x1ad   : > { %v447_v6 = vadd.f32 %v1174_v4, %v446_v5  ;;  %v1229_v7 = vpop.f32.mrb[1].mxu0 }
 0x1ae   : > { %v449_v8 = vpop.f32.mrb[2].mxu0 }
 0x1af   : > { %v2064_v9 = vpack.c.bf16 %v447_v6, %v447_v6  ;;  %v1230_v10 = vpop.f32.mrb[3].mxu0 }
 0x1b1   : > { %573 = vrot.lane.b32.xlu1 %v2064_v9, %s1715_s27  ;;  %460 = vrot.lane.b32.xlu0 %v2064_v9, %s1716_s15  ;;  %s381_s27 = scalar_lea.vmem [#allocation14], %s1173_s28 }
 0x1b2   : > { %s1016_s15 = sshll.u32 %s381_s27, 4  ;;  %s2134_s15 = int_to_ptr.vmem [resolvable:$true] %s1016_s15 }
 0x1b5   : > { %694 = vrot.lane.b32.xlu1 %v2064_v9, %s1717_s30  ;;  %575 = vrot.lane.b32.xlu0 %v2064_v9, %s1718_s13 }
 0x1b9   : > { %813 = vrot.lane.b32.xlu1 %v2064_v9, %s1719_s11  ;;  %692 = vrot.lane.b32.xlu0 %v2064_v9, %s1720_s10  ;;  %s2132_s11 = scalar_lea.hbm %s2188_s6, %s1195_s7  ;;  %s1605_s10 = scalar_lea.vmem %s2134_s15, 128 }
 0x1ba   : > { %p1606_p6 = scmp.ne.s32.totalorder %s2134_s15, %s1605_s10 }
 0x1bc   : > { %p1607_p4 = pnand %p1606_p6, %p2217_p13 }
 0x1bd   : > { %811 = vrot.lane.b32.xlu0 %v2064_v9, %s1721_s20  ;;  %s1729_s20 = smov [#allocation14]  }
 0x1be   : > { %p1608_p9 = pneg %p1607_p4 }
 0x223   : > { %v461_v11 = vpop.permute.xlu0 %460  ;;  %v574_v14 = vpop.permute.xlu1 %573 }
 0x224   : > { %v467_v12 = vsel %vm462_vm2, %v461_v11, 0 }
 0x225   : > { %1232 = vmatpush3.bf16.xpose.msra.mxu1 %v467_v12 }
 0x226   : > { %1243 = vmatprep.subr.bf16.mxu1 %v1713_v0 }
 0x227   : > { %v576_v13 = vpop.permute.xlu0 %575  ;;  %v695_v16 = vpop.permute.xlu1 %694 }
 0x228   : > { %v581_v15 = vsel %vm462_vm2, %v576_v13, 0  ;;  %v700_v17 = vsel %vm462_vm2, %v695_v16, 0 }
 0x22b   : > { %v814_v18 = vpop.permute.xlu1 %813  ;;  %v693_v19 = vpop.permute.xlu0 %692 }
 0x22c   : > { %1234 = vmatmul.mubr.msk.bf16.vlgmr.msra.gmra.mrb[0].mxu1 %vm462_vm2, %v2064_v9  ;;  %v819_v20 = vsel %vm462_vm2, %v814_v18, 0 }
 0x22d   : > { %1244 = vmatpush3.bf16.xpose.msra.mxu1 %v581_v15  ;;  %1245 = vmatprep.mubr.msk.bf16.mxu1 %vm1714_vm0, %v1713_v0 }
 0x22e   : > { %1255 = vmatprep.subr.bf16.mxu1 %v1713_v0 }
 0x22f   : > { %v812_v21 = vpop.permute.xlu0 %811 }
 0x234   : > { %1246 = vmatmul.mubr.msk.bf16.vlgmr.msra.gmra.mrb[4].mxu1 %vm462_vm2, %v574_v14 }
 0x235   : > { %1256 = vmatpush3.bf16.xpose.msra.mxu1 %v700_v17  ;;  %1257 = vmatprep.mubr.msk.bf16.mxu1 %vm1714_vm0, %v1713_v0 }
 0x236   : > { %1267 = vmatprep.subr.bf16.mxu1 %v1713_v0 }
 0x23c   : > { %1258 = vmatmul.mubr.msk.bf16.vlgmr.msra.gmra.mrb[8].mxu1 %vm462_vm2, %v693_v19 }
 0x23d   : > { %1268 = vmatpush3.bf16.xpose.msra.mxu1 %v819_v20  ;;  %1269 = vmatprep.mubr.msk.bf16.mxu1 %vm1714_vm0, %v1713_v0 }
 0x23e   : > { %1279 = vmatprep.subr.bf16.mxu1 %v1713_v0 }
 0x244   : > { %1270 = vmatmul.mubr.msk.bf16.vlgmr.msra.gmra.mrb[12].mxu1 %vm462_vm2, %v812_v21 }
 0x245   : > { %1283 = vmatprep.mubr.msk.bf16.mxu1 %vm1714_vm0, %v1713_v0 }
 0x2ff   : > { %v503_v23 = vpop.f32.mrb[0].mxu1 }
 0x300   : > { %v504_v24 = vadd.f32 %v1178_v22, %v503_v23  ;;  %v1235_v25 = vpop.f32.mrb[1].mxu1 }
 0x301   : > { %v506_v26 = vpop.f32.mrb[2].mxu1 }
 0x302   : > { %v1236_v27 = vpop.f32.mrb[3].mxu1  ;;  %v509_v28 = vsel %vm462_vm2, %v504_v24, -inf }
 0x303   : > { %510 = vmax.xlane.f32.xlu1 %v509_v28 }
 0x307   : > { %v617_v29 = vpop.f32.mrb[4].mxu1 }
 0x308   : > { %v618_v30 = vadd.f32 %v1178_v22, %v617_v29  ;;  %v1247_v31 = vpop.f32.mrb[5].mxu1 }
 0x309   : > { %v620_v32 = vpop.f32.mrb[6].mxu1 }
 0x30a   : > { %v1248_v33 = vpop.f32.mrb[7].mxu1  ;;  %v623_v34 = vsel %vm462_vm2, %v618_v30, -inf }
 0x30b   : > { %624 = vmax.xlane.f32.xlu0 %v623_v34 }
 0x30f   : > { %v736_v35 = vpop.f32.mrb[8].mxu1 }
 0x310   : > { %v737_v36 = vadd.f32 %v1178_v22, %v736_v35  ;;  %v1259_v37 = vpop.f32.mrb[9].mxu1 }
 0x311   : > { %v739_v38 = vpop.f32.mrb[10].mxu1 }
 0x312   : > { %v1260_v39 = vpop.f32.mrb[11].mxu1  ;;  %v742_v40 = vsel %vm462_vm2, %v737_v36, -inf }
 0x313   : > { %743 = vmax.xlane.f32.xlu0 %v742_v40  ;;  %v1416_v40 = vld [vmem:[#allocation11 + $0x8] sm:$0xff]  }
 0x314   : > { %633 = vrot.lane.b32.xlu1 %v2064_v9, %s1722_s9  ;;  %s1609_s9 = sshll.u32 %s1729_s20, 4  ;;  %s1610_s9 = int_to_ptr.vmem [resolvable:$false] %s1609_s9 }
 0x315   : > { %p1612_p0 = scmp.lt.s32.totalorder %s2134_s15, %s1610_s9 }
 0x317   : > { %v855_v41 = vpop.f32.mrb[12].mxu1 }
 0x318   : > { %v1271_v42 = vpop.f32.mrb[13].mxu1  ;;  %v856_v45 = vadd.f32 %v1178_v22, %v855_v41 }
 0x319   : > { %v858_v43 = vpop.f32.mrb[14].mxu1 }
 0x31a   : > { %v1272_v44 = vpop.f32.mrb[15].mxu1  ;;  %v861_v46 = vsel %vm462_vm2, %v856_v45, -inf }
 0x329   : > { %519 = vrot.lane.b32.xlu0 %v2064_v9, %s1723_s14  ;;  %s1611_s14 = scalar_lea.vmem %s1610_s9, 256 }
 0x32a   : > { %p1613_p7 = scmp.lt.s32.totalorder %s1611_s14, %s1605_s10 }
 0x32c   : > { %p1614_p12 = por %p1613_p7, %p1612_p0 }
 0x32d   : > { %871 = vrot.lane.b32.xlu0 %v2064_v9, %s1724_s29 }
 0x32e   : > { %p1615_p1 = pnand %p1614_p12, %p1608_p9 }
 0x338   : > { %862 = vmax.xlane.f32.xlu1 %v861_v46 }
 0x349   : > { %752 = vrot.lane.b32.xlu1 %v2064_v9, %s1725_s2 }
 0x390   : > { %v511_v47 = vpop.xlane.xlu1 %510 }
 0x391   : > { %v512_v48 = vsub.f32 %v504_v24, %v511_v47 }
 0x393   : > { %v513_v49 = vmul.f32 1.442695, %v512_v48 }
 0x394   : > { %v634_v59 = vpop.permute.xlu1 %633 }
 0x395   : > { %1417 = vpow2.f32 %v513_v49  ;;  %v639_v63 = vsel %vm524_vm3, %v634_v59, 0 }
 0x398   : > { %v625_v50 = vpop.xlane.xlu0 %624 }
 0x399   : > { %v626_v51 = vsub.f32 %v618_v30, %v625_v50 }
 0x39b   : > { %v627_v52 = vmul.f32 1.442695, %v626_v51 }
 0x39d   : > { %1419 = vpow2.f32 %v627_v52 }
 0x39f   : > { %v1418_v56 = vpop.eup %1417 }
 0x3a0   : > { %v744_v53 = vpop.xlane.xlu0 %743  ;;  %v518_v61 = vpack.c.bf16 %v1418_v56, %v1418_v56  ;;  %v515_v1 = vsel %vm462_vm2, %v1418_v56, 0.0 }
 0x3a1   : > { %v745_v54 = vsub.f32 %v737_v36, %v744_v53  ;;  %v1415_v36 = vld [vmem:[#allocation11] sm:$0xff]   ;;  %v1190_v53 = vld [vmem:[#allocation12] ss:$0 sm:$0xff] }
 0x3a2   : > { %1280 = vmatpush3.bf16.msra.mxu1 %v1415_v36 }
 0x3a3   : > { %v746_v55 = vmul.f32 1.442695, %v745_v54  ;;  %1281 = vmatprep.subr.bf16.mxu1 %v1713_v0 }
 0x3a4   : > { %v520_v57 = vpop.permute.xlu0 %519 }
 0x3a5   : > { %1421 = vpow2.f32 %v746_v55  ;;  %v526_v58 = vsel %vm524_vm3, %v520_v57, 0 }
 0x3a6   : > { %1238 = vmatpush3.bf16.msra.mxu0 %v526_v58  ;;  %1282 = vmatpush3.bf16.msra.mxu1 %v1416_v40 }
 0x3a7   : > { %v1420_v60 = vpop.eup %1419  ;;  %1249 = vmatprep.subr.bf16.mxu0 %v1713_v0 }
 0x3a8   : > { %v629_v62 = vsel %vm462_vm2, %v1420_v60, 0.0  ;;  %v632_v3 = vpack.c.bf16 %v1420_v60, %v1420_v60  ;;  %v872_v10 = vpop.permute.xlu0 %871 }
 0x3a9   : > { %630 = vadd.xlane.f32.xlu1 %v629_v62  ;;  %1240 = vmatmul.mubr.msk.bf16.vlgmr.msra.gmra.mrb[4].mxu0 %vm462_vm2, %v518_v61  ;;  %v877_v12 = vsel %vm524_vm3, %v872_v10, 0 }
 0x3aa   : > { %1250 = vmatpush3.bf16.msra.mxu0 %v639_v63  ;;  %1251 = vmatprep.mubr.msk.bf16.mxu0 %vm1714_vm0, %v1713_v0 }
 0x3ab   : > { %1261 = vmatprep.subr.bf16.mxu0 %v1713_v0 }
 0x3ad   : > { %516 = vadd.xlane.f32.xlu1 %v515_v1 }
 0x3af   : > { %v1422_v2 = vpop.eup %1421 }
 0x3b0   : > { %v748_v4 = vsel %vm462_vm2, %v1422_v2, 0.0  ;;  %v751_v11 = vpack.c.bf16 %v1422_v2, %v1422_v2 }
 0x3b1   : > { %749 = vadd.xlane.f32.xlu0 %v748_v4  ;;  %1252 = vmatmul.mubr.msk.bf16.vlgmr.msra.gmra.mrb[8].mxu0 %vm462_vm2, %v632_v3 }
 0x3b2   : > { %1263 = vmatprep.mubr.msk.bf16.mxu0 %vm1714_vm0, %v1713_v0 }
 0x3c5   : > { %v863_v5 = vpop.xlane.xlu1 %862 }
 0x3c6   : > { %v864_v6 = vsub.f32 %v856_v45, %v863_v5 }
 0x3c8   : > { %v865_v7 = vmul.f32 1.442695, %v864_v6 }
 0x3c9   : > { %v753_v8 = vpop.permute.xlu1 %752 }
 0x3ca   : > { %1423 = vpow2.f32 %v865_v7  ;;  %v758_v9 = vsel %vm524_vm3, %v753_v8, 0 }
 0x3cb   : > { %1262 = vmatpush3.bf16.msra.mxu0 %v758_v9 }
 0x3cc   : > { %1273 = vmatprep.subr.bf16.mxu0 %v1713_v0 }
 0x3ce   : > { %1264 = vmatmul.mubr.msk.bf16.vlgmr.msra.gmra.mrb[12].mxu0 %vm462_vm2, %v751_v11 }
 0x3cf   : > { %1274 = vmatpush3.bf16.msra.mxu0 %v877_v12  ;;  %1275 = vmatprep.mubr.msk.bf16.mxu0 %vm1714_vm0, %v1713_v0 }
 0x3d4   : > { %v1424_v13 = vpop.eup %1423 }
 0x3d5   : > { %v867_v14 = vsel %vm462_vm2, %v1424_v13, 0.0  ;;  %v870_v15 = vpack.c.bf16 %v1424_v13, %v1424_v13 }
 0x3d6   : > { %868 = vadd.xlane.f32.xlu0 %v867_v14 }
 0x3d7   : > { %1276 = vmatmul.mubr.msk.bf16.vlgmr.msra.gmra.mrb[16].mxu0 %vm462_vm2, %v870_v15 }
 0x436   : > { %v631_v16 = vpop.xlane.xlu1 %630 }
 0x43a   : > { %v517_v17 = vpop.xlane.xlu1 %516 }
 0x43b   : > { %1425 = vrcp.f32 %v517_v17 }
 0x43c   : > { %1427 = vrcp.f32 %v631_v16 }
 0x43e   : > { %v750_v32 = vpop.xlane.xlu0 %749 }
 0x43f   : > { %1429 = vrcp.f32 %v750_v32 }
 0x445   : > { %v1426_v18 = vpop.eup %1425 }
 0x446   : > { %v1428_v25 = vpop.eup %1427 }
 0x449   : > { %v1430_v34 = vpop.eup %1429 }
 0x463   : > { %v869_v33 = vpop.xlane.xlu0 %868 }
 0x464   : > { %1431 = vrcp.f32 %v869_v33 }
 0x46e   : > { %v1432_v43 = vpop.eup %1431 }
 0x47c   : > { %v562_v19 = vpop.f32.mrb[4].mxu0 }
 0x47d   : > { %v569_v20 = vmul.f32 %v1426_v18, %v562_v19  ;;  %v1241_v21 = vpop.f32.mrb[5].mxu0 }
 0x47e   : > { %v565_v22 = vpop.f32.mrb[6].mxu0 }
 0x47f   : > { %v570_v23 = vpack.c.bf16 %v569_v20, %v569_v20  ;;  %v1242_v24 = vpop.f32.mrb[7].mxu0 }
 0x481   : > { %572 = vst.msk [vmem:[#allocation2] sm:$0xf] %vm571_vm4, %v570_v23 }
 0x484   : > { %v675_v26 = vpop.f32.mrb[8].mxu0 }
 0x485   : > { %v682_v27 = vmul.f32 %v1428_v25, %v675_v26  ;;  %v1253_v28 = vpop.f32.mrb[9].mxu0 }
 0x486   : > { %v678_v29 = vpop.f32.mrb[10].mxu0 }
 0x487   : > { %v1198_v30 = vpack.c.bf16 %v682_v27, %v682_v27  ;;  %v1254_v31 = vpop.f32.mrb[11].mxu0 }
 0x489   : > { %687 = vrot.lane.b32.xlu0 %v1198_v30, %s1726_s8 }
 0x4a1   : > { %v794_v35 = vpop.f32.mrb[12].mxu0 }
 0x4a2   : > { %v801_v37 = vmul.f32 %v1430_v34, %v794_v35  ;;  %v1265_v38 = vpop.f32.mrb[13].mxu0 }
 0x4a3   : > { %v797_v39 = vpop.f32.mrb[14].mxu0 }
 0x4a4   : > { %v1199_v41 = vpack.c.bf16 %v801_v37, %v801_v37  ;;  %v1266_v42 = vpop.f32.mrb[15].mxu0 }
 0x4a6   : > { %806 = vrot.lane.b32.xlu1 %v1199_v41, %s1727_s17 }
 0x4aa   : > { %v913_v44 = vpop.f32.mrb[16].mxu0 }
 0x4ab   : > { %v920_v45 = vmul.f32 %v1432_v43, %v913_v44  ;;  %v1277_v46 = vpop.f32.mrb[17].mxu0 }
 0x4ac   : > { %v916_v47 = vpop.f32.mrb[18].mxu0 }
 0x4ad   : > { %v1200_v48 = vpack.c.bf16 %v920_v45, %v920_v45  ;;  %v1278_v49 = vpop.f32.mrb[19].mxu0 }
 0x4af   : > { %925 = vrot.lane.b32.xlu1 %v1200_v48, %s1728_s0 }
 0x4fb   : > { %v688_v50 = vpop.permute.xlu0 %687 }
 0x4fc   : > { %691 = vst.msk [vmem:[#allocation2] sm:$0xf] %vm690_vm5, %v688_v50 }
 0x518   : > { %v807_v51 = vpop.permute.xlu1 %806 }
 0x519   : > { %810 = vst.msk [vmem:[#allocation2] sm:$0xf] %vm809_vm6, %v807_v51 }
 0x521   : > { %v926_v0 = vpop.permute.xlu1 %925 }
 0x522   : > { %929 = vst.msk [vmem:[#allocation2] sm:$0xf] %vm928_vm7, %v926_v0 }
 0x529   : > { %v934_v52 = vld [vmem:[#allocation2] sm:$0xf] }
 0x52a   : > { %1284 = vmatmul.mubr.msk.bf16.vlgmr.msra.gmra.mrb[16].mxu1 %vm408_vm1, %v934_v52 }
 0x5fd   : > { %v995_v54 = vpop.f32.mrb[16].mxu1 }
 0x5fe   : > { %v996_v55 = vadd.f32 %v1190_v53, %v995_v54  ;;  %v1285_v56 = vpop.f32.mrb[17].mxu1 }
 0x5ff   : > { %v998_v57 = vpop.f32.mrb[18].mxu1 }
 0x600   : > { %v1286_v58 = vpop.f32.mrb[19].mxu1  ;;  %1001 = vst.msk [vmem:[%s381_s27] sm:$0xff] %vm408_vm1, %v996_v55 }
 0x601   : > { %1618 = shalt.err (!%p1615_p1)
}
 0x602   : > { %s1619_s3 = scalar_lea.hbm %s2132_s11, 128  ;;  %s1623_s8 = scalar_lea.hbm %s2188_s6, 256 }
 0x603   : > { %p1620_p2 = scmp.ne.s32.totalorder %s2132_s11, %s1619_s3  ;;  %p1624_p8 = scmp.lt.u32.totalorder %s2132_s11, %s2188_s6 }
 0x604   : > { %p1625_p3 = scmp.lt.u32.totalorder %s1623_s8, %s1619_s3  ;;  %p1627_p6 = scmp.lt.u32.totalorder %s1619_s3, %s2132_s11 }
 0x605   : > { %p1621_p10 = pnand %p1620_p2, %p2217_p13 }
 0x606   : > { %p1626_p11 = por %p1625_p3, %p1624_p8 }
 0x607   : > { %p1622_p5 = pneg %p1621_p10 }
 0x608   : > { %p1628_p4 = por %p1627_p6, %p1626_p11 }
 0x60a   : > { %p1629_p9 = pnand %p1628_p4, %p1622_p5 }
 0x60c   : > { %1632 = shalt.err (!%p1629_p9)
}
 0x60d   : > { %1307 = dma.vmem_to_hbm [thread:$0]  (%p2217_p13), %s2134_s15, 128, %s2132_s11, %s1003_s24  }
 0x60e PF: > { %s1028_s28 = sand.u32 1, %s1683_s21   ;;  %p2218_p0 = scmp.ne.s32.totalorder %s2205_s19, 0 }
 0x60f   : > { %p2219_p7 = scmp.ge.s32.totalorder %s1703_s26, 2  ;;  %s1029_s7 = scalar_lea.sflag [#allocation5], %s1028_s28 }
 0x611   : > { %p1330_p12 = pnand %p2219_p7, %p2218_p0 }
 0x613   : > { %1678 = dma.done.wait (!%p1330_p12), %s1029_s7, 128  }
 0x614   : > { %1680 = vsyncadd (!%p1330_p12), %s1029_s7, 4294967168  ;;  %s27_s26 = sadd.s32 1, %s1703_s26   ;;  %s2220_s21 = smov %s1687_s22 }
 0x615   : > { %p24_p1 = scmp.ge.s32.totalorder %s27_s26, 4   ;;  %s2221_s22 = smov %s1691_s23 }
 0x616   : > { %s2222_s23 = smov %s1944_s18  ;;  %s2223_s24 = smov %s1699_s25 }
 0x617   : > { %s2224_s25 = smov %s2226_s12  ;;  %26 = sbr.rel (!%p24_p1) target bundleno = 14 (0xe), region = 124 }
 0x61e   :  { %1034 = vsyncpa [#allocation4], 1 }
 0x61f   :  { %1036 = vsyncpa [#allocation4 + $0x1], 1 }
 0x620   :  { %1037 = vsyncpa [#allocation7], 1 }
 0x621   :  { %1039 = vsyncpa [#allocation7 + $0x1], 1 }
 0x622   :  { %1040 = vsyncpa [#allocation10], 1 }
 0x623   :  { %1041 = vsyncpa [#allocation13], 1 }
 0x624   :  { %1042 = vsyncpa [#allocation5], 1 }
 0x625   :  { %1044 = vsyncpa [#allocation5 + $0x1], 1 }

</bundles_post_ra>
